<compile_context>
chip_gen: v6e
topology: v6e:2x2x1
jax: 0.10.0
libtpu: 0.0.40
codegen_flags: <defaults>
</compile_context>

<pallas_src>
import math

import jax
import jax.numpy as jnp
from jax.experimental import pallas as pl
from jax.experimental.pallas import tpu as pltpu


# ----------------------------------------------------------------------------
# Kernels
# ----------------------------------------------------------------------------
def _condconv_kernel_premix(wmix_ref, patch_ref, out_ref):
    # wmix_ref  : VMEM (1, OC, Kp)  compute dtype   (per-sample mixed weight)
    # patch_ref : VMEM (1, Kp, TP)  compute dtype   (this sample's patch tile)
    # out_ref   : VMEM (1, OC, TP)  out dtype       (lane-dense output tile)
    out_ref[0] = jnp.dot(
        wmix_ref[0], patch_ref[0],
        preferred_element_type=jnp.float32).astype(out_ref.dtype)


def _condconv_kernel_resident(routing_sm, wexp_ref, patch_ref, out_ref,
                              wmix_ref):
    # routing_sm : SMEM (B*E,) f32                 (scalar prefetch, 1-D)
    # wexp_ref   : VMEM (E, OC, Kp) compute dtype  (resident, single-buffered)
    # patch_ref  : VMEM (1, Kp, TP) compute dtype
    # out_ref    : VMEM (1, OC, TP) out dtype
    # wmix_ref   : VMEM (OC, Kp)    compute dtype  (per-sample mixed weight)
    b = pl.program_id(0)
    num_experts = wexp_ref.shape[0]

    # Mix the expert weights once per sample (first P tile only; the P axis is
    # innermost and "arbitrary", so tile 0 runs first on the same core).  Mix
    # arithmetic stays in f32 on the VPU (v5e-safe); weights are stored bf16
    # and upcast here, the cast back to the MXU compute dtype happens once.
    @pl.when(pl.program_id(1) == 0)
    def _mix():
        acc = routing_sm[b * num_experts] * wexp_ref[0].astype(jnp.float32)
        for e in range(1, num_experts):
            acc = acc + routing_sm[b * num_experts + e] * \
                wexp_ref[e].astype(jnp.float32)
        wmix_ref[...] = acc.astype(wmix_ref.dtype)

    out_ref[0] = jnp.dot(
        wmix_ref[...], patch_ref[0],
        preferred_element_type=jnp.float32).astype(out_ref.dtype)


# ----------------------------------------------------------------------------
# Helpers
# ----------------------------------------------------------------------------
def _round_up(x, m):
    return ((x + m - 1) // m) * m


def _vmem_capacity_bytes():
    """Physical VMEM capacity (falls back to the v7x-conservative 64 MiB)."""
    try:
        return int(pltpu.get_tpu_info().vmem_capacity_bytes)
    except Exception:  # pragma: no cover - query not available
        return 64 << 20


def _select_p_tile(p_pad, kp, oc, cd_size, out_size, vmem_cap,
                   resident_bytes, patch_buffers=2):
    """Largest lane-dense P tile whose pipelined buffers fit the VMEM budget.

    TP is capped at 512 on 64 MiB-VMEM parts (v7x) / 1024 otherwise; larger
    tiles buy almost nothing once per-step overhead is amortized but cost
    Kp*TP*itemsize per extra buffer.
    """
    cap = 1024 if vmem_cap > (64 << 20) else 512
    budget = max(vmem_cap // 2 - resident_bytes, 0)
    for tp in (1024, 512, 256, 128):
        if tp > cap or p_pad % tp:
            continue
        cost = patch_buffers * kp * tp * cd_size + 2 * oc * tp * out_size
        if cost <= budget:
            return tp
    return 128


# ----------------------------------------------------------------------------
# Wrapper (matches CondConv2d.forward with static padding, bias=False)
# ----------------------------------------------------------------------------
def condconv2d(x, routing_weights, expert_weight, *, out_channels,
               kernel_size=(3, 3), stride=(1, 1), padding=(1, 1),
               dilation=(1, 1), groups=1, compute_dtype=jnp.bfloat16,
               out_dtype=jnp.float32, force_precompute=None,
               patch_buffers=2):
    """CondConv2d forward.

    x              : (B, C, H, W)
    routing_weights: (B, E)
    expert_weight  : (E, OC * (C // groups) * KH * KW)  (PyTorch flat order)
    out_dtype      : set to bf16 on mem-bound parts (v5e) when the consumer
                     doesn't need f32 — halves the output writeback.
    """
    assert groups == 1  # TODO(synk): grouped CondConv (groups > 1) not implemented.
    B, C, H, W = x.shape
    E = routing_weights.shape[1]
    KH, KW = kernel_size
    sh, sw = stride
    dh, dw = dilation
    ph, pw = padding
    OC = out_channels
    K = (C // groups) * KH * KW

    H_out = (H + 2 * ph - dh * (KH - 1) - 1) // sh + 1
    W_out = (W + 2 * pw - dw * (KW - 1) - 1) // sw + 1
    P = H_out * W_out

    cd_size = jnp.dtype(compute_dtype).itemsize
    out_size = jnp.dtype(out_dtype).itemsize
    Kp = _round_up(K, 128)          # full MXU contraction passes
    P_pad = _round_up(P, 128)       # lane-dense loads/stores, no masked vst
    vmem_cap = _vmem_capacity_bytes()

    # --- structure selection: wrapper-precomputed mix vs resident experts ---
    resident_experts_bytes = E * OC * Kp * cd_size
    if force_precompute is None:
        precompute = (B <= 2 * E) or (resident_experts_bytes > vmem_cap // 4)
    else:
        precompute = bool(force_precompute)

    # --- im2col as (B, Kp, P_pad): cast FIRST, then stack + reshape + pad
    #     (no XLA transpose).  K ordering c*KH*KW + kh*KW + kw matches the
    #     PyTorch flat expert weight. ---
    x_cd = x.astype(compute_dtype)
    x_pad = jnp.pad(x_cd, ((0, 0), (0, 0), (ph, ph), (pw, pw)))
    taps = []
    for kh in range(KH):
        for kw in range(KW):
            taps.append(
                x_pad[:, :,
                      kh * dh: kh * dh + (H_out - 1) * sh + 1: sh,
                      kw * dw: kw * dw + (W_out - 1) * sw + 1: sw])
    patches = jnp.stack(taps, axis=2).reshape(B, K, P)
    patches = jnp.pad(patches, ((0, 0), (0, Kp - K), (0, P_pad - P)))

    if precompute:
        # Per-sample mixed weight computed by one XLA matmul (f32 accumulate,
        # single bf16 quantization), fed to the kernel per sample.  Both grid
        # axes are "parallel" -> megacore can split P tiles even at B == 1.
        wmix = jnp.dot(routing_weights.astype(jnp.float32),
                       expert_weight.astype(jnp.float32),
                       preferred_element_type=jnp.float32)      # (B, OC*K)
        wmix = wmix.reshape(B, OC, K)
        wmix = jnp.pad(wmix, ((0, 0), (0, 0), (0, Kp - K))).astype(compute_dtype)

        resident = 2 * OC * Kp * cd_size           # double-buffered per-sample
        TP = _select_p_tile(P_pad, Kp, OC, cd_size, out_size, vmem_cap,
                            resident, patch_buffers)
        needed = (resident + patch_buffers * Kp * TP * cd_size
                  + 2 * OC * TP * out_size)

        patch_spec = pl.BlockSpec((1, Kp, TP), lambda b, p: (b, 0, p))
        if patch_buffers != 2:
            patch_spec = pl.BlockSpec((1, Kp, TP), lambda b, p: (b, 0, p),
                                      pipeline_mode=pl.Buffered(patch_buffers))

        grid = (B, P_pad // TP)
        grid_spec = pltpu.PrefetchScalarGridSpec(
            num_scalar_prefetch=0,
            grid=grid,
            in_specs=[
                pl.BlockSpec((1, OC, Kp), lambda b, p: (b, 0, 0)),
                patch_spec,
            ],
            out_specs=pl.BlockSpec((1, OC, TP), lambda b, p: (b, 0, p)),
        )
        dim_semantics = ("parallel", "parallel")
        kernel = _condconv_kernel_premix
        args = (wmix, patches)
        flops = 2 * B * P_pad * Kp * OC
        bytes_accessed = (wmix.size * cd_size + patches.size * cd_size
                          + B * OC * P_pad * out_size)
    else:
        # Resident bf16 experts (single-buffered: the block never changes),
        # per-sample mix inside the kernel, flat 1-D routing in SMEM.
        wexp = jnp.pad(expert_weight.reshape(E, OC, K).astype(compute_dtype),
                       ((0, 0), (0, 0), (0, Kp - K)))
        routing_flat = routing_weights.astype(jnp.float32).reshape(B * E)

        resident = E * OC * Kp * cd_size            # single-buffered weights
        scratch = OC * Kp * cd_size                 # mixed-weight scratch
        TP = _select_p_tile(P_pad, Kp, OC, cd_size, out_size, vmem_cap,
                            resident + scratch, patch_buffers)
        needed = (resident + scratch + patch_buffers * Kp * TP * cd_size
                  + 2 * OC * TP * out_size)

        patch_spec = pl.BlockSpec((1, Kp, TP), lambda b, p, r: (b, 0, p))
        if patch_buffers != 2:
            patch_spec = pl.BlockSpec((1, Kp, TP), lambda b, p, r: (b, 0, p),
                                      pipeline_mode=pl.Buffered(patch_buffers))

        grid = (B, P_pad // TP)
        grid_spec = pltpu.PrefetchScalarGridSpec(
            num_scalar_prefetch=1,
            grid=grid,
            in_specs=[
                # Constant index_map -> resident; single-buffer it (default
                # double-buffering would cost 2x E*OC*Kp for no benefit).
                pl.BlockSpec((E, OC, Kp), lambda b, p, r: (0, 0, 0),
                             pipeline_mode=pl.Buffered(1)),
                patch_spec,
            ],
            out_specs=pl.BlockSpec((1, OC, TP), lambda b, p, r: (b, 0, p)),
            scratch_shapes=[pltpu.VMEM((OC, Kp), compute_dtype)],
        )
        dim_semantics = ("parallel", "arbitrary")
        kernel = _condconv_kernel_resident
        args = (routing_flat, wexp, patches)
        flops = 2 * B * P_pad * Kp * OC + 2 * B * E * OC * Kp
        bytes_accessed = (wexp.size * cd_size + routing_flat.size * 4
                          + patches.size * cd_size + B * OC * P_pad * out_size)

    # Explicit scoped-VMEM limit sized from the actual footprint (default
    # scoped limit is only 16/32 MiB), capped below physical capacity.
    vmem_limit = int(min(vmem_cap - (4 << 20),
                         max(32 << 20, needed + (8 << 20))))

    cost = pl.CostEstimate(flops=int(flops), transcendentals=0,
                           bytes_accessed=int(bytes_accessed))

    out = pl.pallas_call(
        kernel,
        out_shape=jax.ShapeDtypeStruct((B, OC, P_pad), out_dtype),
        grid_spec=grid_spec,
        compiler_params=pltpu.CompilerParams(
            dimension_semantics=dim_semantics,
            vmem_limit_bytes=vmem_limit),
        cost_estimate=cost,
    )(*args)

    # (B, OC, P_pad) -> (B, OC, H_out, W_out): slice off the P pad + reshape.
    return out[:, :, :P].reshape(B, OC, H_out, W_out)


# ----------------------------------------------------------------------------
# Pure-JAX reference (per-sample conv) for correctness checking
# ----------------------------------------------------------------------------
def _ref_condconv(x, routing, expert_weight, out_channels, kernel_size,
                  padding):
    B, C, H, W = x.shape
    KH, KW = kernel_size
    OC = out_channels
    w = jnp.dot(routing, expert_weight).reshape(B, OC, C, KH, KW)

    def one(xb, wb):
        return jax.lax.conv_general_dilated(
            xb[None], wb, window_strides=(1, 1),
            padding=((padding[0], padding[0]), (padding[1], padding[1])),
            dimension_numbers=('NCHW', 'OIHW', 'NCHW'),
            precision=jax.lax.Precision.HIGHEST)[0]

    return jax.vmap(one)(x, w)


if __name__ == "__main__":
    # CondConv2d(in_channels=4, out_channels=8, kernel_size=3, stride=1,
    #            padding='' -> static pad 1, dilation=1, groups=1,
    #            bias=False, num_experts=4)
    B, C, H, W = 2, 4, 16, 16
    OC, E, KH, KW = 8, 4, 3, 3

    key = jax.random.PRNGKey(0)
    kx, kr, kw = jax.random.split(key, 3)

    x = jax.random.normal(kx, (B, C, H, W), dtype=jnp.float32)
    routing = jax.nn.sigmoid(jax.random.normal(kr, (B, E), dtype=jnp.float32))

    # kaiming_uniform_(a=sqrt(5)) per expert: bound = 1/sqrt(fan_in)
    fan_in = C * KH * KW
    bound = 1.0 / math.sqrt(fan_in)
    expert_weight = jax.random.uniform(
        kw, (E, OC * C * KH * KW), minval=-bound, maxval=bound,
        dtype=jnp.float32)

    out = condconv2d(x, routing, expert_weight, out_channels=OC,
                     kernel_size=(KH, KW), stride=(1, 1), padding=(1, 1),
                     dilation=(1, 1), groups=1,
                     compute_dtype=jnp.bfloat16, out_dtype=jnp.float32)
    out = jax.block_until_ready(out)

    ref = _ref_condconv(x, routing, expert_weight, OC, (KH, KW), (1, 1))
    assert out.shape == (B, OC, H, W), out.shape
    # bf16 MXU operands with f32 accumulation -> loosened tolerance vs f32 ref.
    max_err = float(jnp.max(jnp.abs(out - ref)))
    assert jnp.allclose(out, ref, atol=5e-2, rtol=5e-2), max_err

    print("KERNEL_OK")
</pallas_src>

<mosaic_0001>
module attributes {stable_mosaic.version = 11 : i64} {
  func.func @_condconv_kernel_premix(%arg0: i32, %arg1: i32, %arg2: memref<1x8x128xbf16, #tpu.memory_space<vmem>>, %arg3: memref<1x128x256xbf16, #tpu.memory_space<vmem>>, %arg4: memref<1x8x256xf32, #tpu.memory_space<vmem>>) attributes {dimension_semantics = [#tpu.dimension_semantics<parallel>, #tpu.dimension_semantics<parallel>], iteration_bounds = array<i64: 2, 1>, scalar_prefetch = 0 : i64, scratch_operands = 0 : i64, tpu.core_type = #tpu.core_type<tc>, window_params = [{transform_indices = @transform_0, window_bounds = array<i64: 1, 8, 128>}, {transform_indices = @transform_1, window_bounds = array<i64: 1, 128, 256>}, {transform_indices = @transform_2, window_bounds = array<i64: 1, 8, 256>}]} {
    %c0 = arith.constant 0 : index
    %c0_0 = arith.constant 0 : index
    %c0_1 = arith.constant 0 : index
    %0 = vector.load %arg2[%c0, %c0_0, %c0_1] : memref<1x8x128xbf16, #tpu.memory_space<vmem>>, vector<1x8x128xbf16>
    %1 = vector.shape_cast %0 : vector<1x8x128xbf16> to vector<8x128xbf16>
    %c0_2 = arith.constant 0 : index
    %c0_3 = arith.constant 0 : index
    %c0_4 = arith.constant 0 : index
    %2 = vector.load %arg3[%c0_2, %c0_3, %c0_4] : memref<1x128x256xbf16, #tpu.memory_space<vmem>>, vector<1x128x256xbf16>
    %3 = vector.shape_cast %2 : vector<1x128x256xbf16> to vector<128x256xbf16>
    %cst = arith.constant dense<0.000000e+00> : vector<8x256xf32>
    %4 = tpu.matmul %1, %3, %cst {dimension_numbers = #tpu.dot_dimension_numbers<[1], [0], [0], [1], [0, 0, 1, 1], [], []>} : vector<8x128xbf16>, vector<128x256xbf16>, vector<8x256xf32> -> vector<8x256xf32>
    %c0_5 = arith.constant 0 : index
    %c0_6 = arith.constant 0 : index
    %c0_7 = arith.constant 0 : index
    %5 = vector.load %arg4[%c0_5, %c0_6, %c0_7] : memref<1x8x256xf32, #tpu.memory_space<vmem>>, vector<1x8x256xf32>
    %6 = vector.shape_cast %5 : vector<1x8x256xf32> to vector<8x256xf32>
    %7 = vector.shape_cast %4 : vector<8x256xf32> to vector<1x8x256xf32>
    tpu.vector_store %arg4[%c0_5, %c0_6, %c0_7], %7 {strides = array<i32>} : memref<1x8x256xf32, #tpu.memory_space<vmem>>, vector<1x8x256xf32>,
    return
  }
  func.func @transform_0(%arg0: i32, %arg1: i32) -> (i32, i32, i32) {
    %c0_i32 = arith.constant 0 : i32
    %c0_i32_0 = arith.constant 0 : i32
    %c0_i32_1 = arith.constant 0 : i32
    return %arg0, %c0_i32, %c0_i32_0 : i32, i32, i32
  }
  func.func @transform_1(%arg0: i32, %arg1: i32) -> (i32, i32, i32) {
    %c0_i32 = arith.constant 0 : i32
    %c0_i32_0 = arith.constant 0 : i32
    return %arg0, %c0_i32, %arg1 : i32, i32, i32
  }
  func.func @transform_2(%arg0: i32, %arg1: i32) -> (i32, i32, i32) {
    %c0_i32 = arith.constant 0 : i32
    %c0_i32_0 = arith.constant 0 : i32
    return %arg0, %c0_i32, %arg1 : i32, i32, i32
  }
}

</mosaic_0001>

<bundles_post_ra>
// kernel: tpu_custom_call.1
= control target key start
LH: loop header
LB: loop body
LE: loop exit
PB: predicated region body
PF: predicated region fallthrough
CT: control target
= control target key end

     0   :  { %7 = vsyncpa [#allocation3], 0  ;;  %s975_s0 = inlined_call_operand.hbm [shape: bf16[2,8,128], index: 0, kind: input, shape index: {}]   ;;  %s976_s1 = inlined_call_operand.hbm [shape: bf16[2,128,256], index: 1, kind: input, shape index: {}]   ;;  %s977_s2 = inlined_call_operand.hbm [shape: f32[2,8,256], index: 2, kind: output, shape index: {}]  }
   0x1   :  { %9 = vsyncpa [#allocation3 + $0x1], 0 }
   0x2   :  { %10 = vsyncpa [#allocation6], 0 }
   0x3   :  { %12 = vsyncpa [#allocation6 + $0x1], 0 }
   0x4   :  { %13 = vsyncpa [#allocation4], 0 }
   0x5   :  { %15 = vsyncpa [#allocation4 + $0x1], 0  ;;  %s777_s9 = smov 0   ;;  %s779_s10 = smov 0  }
   0x6   :  { %s781_s11 = smov 0   ;;  %s783_s12 = smov 0  }
   0x7   :  { %s785_s13 = smov 0   ;;  %s787_s14 = smov 0  }
   0x8 LB: > { %s484_s15 = sadd.s32 4294967295, %s754_s14   ;;  %s485_s16 = sadd.s32 4294967294, %s754_s14   ;;  %s754_s14 = sphi %s787_s14, %s21_s14   ;;  %s750_s13 = sphi %s785_s13, %s989_s13   ;;  %s746_s12 = sphi %s783_s12, %s988_s12   ;;  %s742_s11 = sphi %s781_s11, %s987_s11   ;;  %s738_s10 = sphi %s779_s10, %s986_s10   ;;  %s734_s9 = sphi %s777_s9, %s985_s9  }
   0x9   : > { %s33_s17 = sadd.s32 1, %s750_s13  ;;  %s40_s18 = sadd.s32 1, %s742_s11 }
   0xa   : > { %p35_p0 = scmp.ge.s32.totalorder %s33_s17, 2  ;;  %p47_p1 = scmp.ne.s32.totalorder %s742_s11, %s738_s10 }
   0xb   : > { %p48_p2 = scmp.eq.s32.totalorder %s754_s14, 0  ;;  %p53_p3 = scmp.ne.s32.totalorder %s738_s10, %s734_s9 }
   0xc   : > { %s991_s17 = smov (%p35_p0, %s33_s17), 0  ;;  %p54_p5 = scmp.eq.s32.totalorder %s484_s15, 0 }
   0xd   : > { %p818_p4 = por %p48_p2, %p47_p1  ;;  %s37_s20 = ssub.s32 %s750_s13, %s991_s17 }
   0xe   : > { %p107_p6 = scmp.eq.s32.totalorder %s484_s15, 1  ;;  %p38_p7 = scmp.eq.s32.totalorder %s37_s20, 0 }
   0xf   : > { %p824_p8 = por %p54_p5, %p53_p3  ;;  %p113_p10 = scmp.eq.s32.totalorder %s485_s16, 1 }
  0x10   : > { %p828_p9 = por %p107_p6, %p47_p1  ;;  %p537_p13 = scmp.lt.s32.totalorder %s754_s14, 2 }
  0x11   : > { %s833_s23 = scalar_select %p38_p7, %s742_s11, %s40_s18  }
  0x12   : > { %p835_p11 = por %p113_p10, %p53_p3  ;;  %s842_s25 = sand.u32 1, %s742_s11  }
  0x13   : > { %s488_s26 = sshll.u32 %s842_s25, 2  ;;  %s489_s27 = sshll.u32 %s750_s13, 6 }
  0x14   : > { %s142_s30 = scalar_lea.hbm %s975_s0, %s489_s27  ;;  %s137_s3 = scalar_lea.vmem [#allocation2], %s488_s26 }
  0x15   : > { %s144_s4 = sshll.u32 %s137_s3, 4  ;;  %p851_p0 = pnand %p537_p13, %p818_p4  ;;  %s145_s4 = int_to_ptr.vmem [resolvable:$true] %s144_s4 }
  0x16   : > { %p493_p1 = scmp.ge.s32.totalorder %s754_s14, 1  ;;  %p172_p2 = scmp.lt.s32.totalorder %s754_s14, 3 }
  0x17   : > { %s134_s6 = scalar_lea.sflag [#allocation3], %s842_s25  ;;  %p616_p3 = pneg %p851_p0 }
  0x18   : > { %s627_s7 = scalar_lea.vmem %s145_s4, 64  ;;  %s756_s8 = smov [#allocation2]  }
  0x19   : > { %p628_p5 = scmp.ne.s32.totalorder %s145_s4, %s627_s7  ;;  %s632_s15 = sshll.u32 %s756_s8, 4  ;;  %s633_s15 = int_to_ptr.vmem [resolvable:$false] %s632_s15 }
  0x1a   : > { %s634_s16 = scalar_lea.vmem %s633_s15, 128  ;;  %p635_p4 = scmp.lt.s32.totalorder %s145_s4, %s633_s15 }
  0x1b   : > { %p630_p6 = pnand %p628_p5, %p616_p3  ;;  %p636_p10 = scmp.lt.s32.totalorder %s634_s16, %s627_s7 }
  0x1d   : > { %p631_p7 = pneg %p630_p6  ;;  %p637_p13 = por %p636_p10, %p635_p4 }
  0x1f   : > { %p638_p12 = pnand %p637_p13, %p631_p7 }
  0x21   : > { %641 = shalt.err (!%p638_p12)
}
  0x22   : > { %529 = dma.hbm_to_vmem [thread:$0]  (!%p851_p0), %s142_s30, 64, %s145_s4, %s134_s6  }
  0x23   : > { %p869_p5 = pnand %p493_p1, %p172_p2  ;;  %s490_s19 = sshll.u32 %s842_s25, 7 }
  0x24   : > { %s518_s20 = sshll.u32 %s750_s13, 11  ;;  %s155_s29 = scalar_lea.vmem [#allocation5], %s490_s19 }
  0x25   : > { %s163_s28 = scalar_lea.hbm %s976_s1, %s518_s20  ;;  %s164_s3 = sshll.u32 %s155_s29, 4  ;;  %s165_s3 = int_to_ptr.vmem [resolvable:$true] %s164_s3 }
  0x26   : > { %s152_s7 = scalar_lea.sflag [#allocation6], %s842_s25  ;;  %s655_s8 = scalar_lea.vmem %s165_s3, 2048 }
  0x27   : > { %p656_p12 = scmp.ne.s32.totalorder %s165_s3, %s655_s8  ;;  %s757_s30 = smov [#allocation5]  }
  0x28   : > { %s660_s4 = sshll.u32 %s757_s30, 4  ;;  %s661_s4 = int_to_ptr.vmem [resolvable:$false] %s660_s4 }
  0x29   : > { %p658_p6 = pnand %p656_p12, %p616_p3  ;;  %s662_s6 = scalar_lea.vmem %s661_s4, 4096 }
  0x2a   : > { %p663_p1 = scmp.lt.s32.totalorder %s165_s3, %s661_s4  ;;  %p664_p2 = scmp.lt.s32.totalorder %s662_s6, %s655_s8 }
  0x2b   : > { %p659_p7 = pneg %p658_p6 }
  0x2c   : > { %p665_p4 = por %p664_p2, %p663_p1 }
  0x2e   : > { %p666_p10 = pnand %p665_p4, %p659_p7 }
  0x30   : > { %669 = shalt.err (!%p666_p10)
}
  0x31   : > { %s758_s15 = smov 128   ;;  %s759_s16 = smov 8  }
  0x32   : > { %532 = dma.hbm_to_vmem [thread:$0]  (!%p851_p0), %s163_s28, 2048, %s165_s3, %s152_s7, %s758_s15, %s758_s15, %s759_s16  }
  0x33   : > { %176 = sbr.rel (%p869_p5) target bundleno = 302 (0x12e), region = 28  ;;  %s887_s25 = sand.u32 (!%p869_p5), 1, %s738_s10  }
  0x34   : > { %s494_s19 = sshll.u32 (!%p869_p5), %s887_s25, 2  ;;  %s179_s20 = scalar_lea.sflag (!%p869_p5), [#allocation3], %s887_s25 }
  0x35   : > { %s891_s26 = scalar_lea.vmem (!%p869_p5), [#allocation2], %s494_s19 }
  0x38   : > { %721 = dma.done.wait (%p824_p8), %s179_s20, 64  }
  0x39   : > { %723 = vsyncadd (%p824_p8), %s179_s20, 4294967232  ;;  %s495_s5 = sshll.u32 %s887_s25, 7  ;;  %s188_s18 = scalar_lea.sflag [#allocation6], %s887_s25 }
  0x3a   : > { %s899_s27 = scalar_lea.vmem [#allocation5], %s495_s5 }
  0x3b   : > { %725 = dma.done.wait (%p824_p8), %s188_s18, 2048  }
  0x3c   : > { %727 = vsyncadd (%p824_p8), %s188_s18, 4294965248  ;;  %v760_v0 = vmov 0   ;;  %v590_v1 = vld [vmem:[%s899_s27 + $0x74] ss:$8 sps:$4 sm:$0xff]   ;;  %v592_v2 = vld [vmem:[%s899_s27 + $0x70] ss:$8 sps:$4 sm:$0xff]  }
  0x3d   : > { %349 = vmatprep.mubr.bf16.mxu0 %v760_v0  ;;  %317 = vmatprep.subr.bf16.mxu0 %v590_v1  ;;  %v593_v3 = vld [vmem:[%s899_s27 + $0x64] ss:$8 sps:$4 sm:$0xff]   ;;  %v595_v4 = vld [vmem:[%s899_s27 + $0x60] ss:$8 sps:$4 sm:$0xff]   ;;  %v596_v5 = vld [vmem:[%s899_s27 + $0x54] ss:$8 sps:$4 sm:$0xff]  }
  0x3e   : > { %318 = vmatpush1.bf16.msra.mxu0 %v592_v2  ;;  %v598_v6 = vld [vmem:[%s899_s27 + $0x50] ss:$8 sps:$4 sm:$0xff]   ;;  %v599_v7 = vld [vmem:[%s899_s27 + $0x44] ss:$8 sps:$4 sm:$0xff]   ;;  %v601_v8 = vld [vmem:[%s899_s27 + $0x40] ss:$8 sps:$4 sm:$0xff]  }
  0x3f   : > { %319 = vmatprep.subr.bf16.mxu0 %v593_v3  ;;  %v602_v9 = vld [vmem:[%s899_s27 + $0x34] ss:$8 sps:$4 sm:$0xff]   ;;  %v604_v10 = vld [vmem:[%s899_s27 + $0x30] ss:$8 sps:$4 sm:$0xff]   ;;  %v605_v11 = vld [vmem:[%s899_s27 + $0x24] ss:$8 sps:$4 sm:$0xff]  }
  0x40   : > { %v607_v12 = vld [vmem:[%s899_s27 + $0x20] ss:$8 sps:$4 sm:$0xff]   ;;  %v608_v13 = vld [vmem:[%s899_s27 + $0x14] ss:$8 sps:$4 sm:$0xff]   ;;  %v610_v14 = vld [vmem:[%s899_s27 + $0x10] ss:$8 sps:$4 sm:$0xff]  }
  0x41   : > { %v611_v15 = vld [vmem:[%s899_s27 + $0x4] ss:$8 sps:$4 sm:$0xff]   ;;  %v613_v16 = vld [vmem:[%s899_s27] ss:$8 sps:$4 sm:$0xff]   ;;  %v220_v17 = vld [vmem:[%s891_s26] sm:$0xf] }
  0x42   : > { %320 = vmatpush1.bf16.msra.mxu0 %v595_v4  ;;  %s496_s21 = sshll.u32 %s887_s25, 4  ;;  %s519_s3 = sshll.u32 %s746_s12, 8 }
  0x43   : > { %321 = vmatprep.subr.bf16.mxu0 %v596_v5  ;;  %s216_s28 = scalar_lea.vmem [#allocation7], %s496_s21  ;;  %s929_s30 = scalar_lea.hbm %s977_s2, %s519_s3 }
  0x44   : > { %s377_s29 = sshll.u32 %s216_s28, 4  ;;  %s361_s4 = scalar_lea.sflag [#allocation4], %s887_s25  ;;  %s924_s29 = int_to_ptr.vmem [resolvable:$true] %s377_s29 }
  0x45   : > { %s670_s6 = scalar_lea.vmem %s924_s29, 256  ;;  %s761_s12 = smov [#allocation7]  }
  0x46   : > { %322 = vmatpush1.bf16.msra.mxu0 %v598_v6  ;;  %p671_p8 = scmp.ne.s32.totalorder %s924_s29, %s670_s6  ;;  %s674_s15 = sshll.u32 %s761_s12, 4  ;;  %s675_s15 = int_to_ptr.vmem [resolvable:$false] %s674_s15 }
  0x47   : > { %323 = vmatprep.subr.bf16.mxu0 %v599_v7  ;;  %s676_s16 = scalar_lea.vmem %s675_s15, 512  ;;  %p677_p13 = scmp.lt.s32.totalorder %s924_s29, %s675_s15 }
  0x48   : > { %p672_p0 = pnand %p671_p8, %p828_p9  ;;  %p678_p5 = scmp.lt.s32.totalorder %s676_s16, %s670_s6 }
  0x4a   : > { %324 = vmatpush1.bf16.msra.mxu0 %v601_v8  ;;  %p673_p3 = pneg %p672_p0  ;;  %p679_p12 = por %p678_p5, %p677_p13 }
  0x4b   : > { %325 = vmatprep.subr.bf16.mxu0 %v602_v9 }
  0x4c   : > { %p680_p6 = pnand %p679_p12, %p673_p3 }
  0x4e   : > { %326 = vmatpush1.bf16.msra.mxu0 %v604_v10 }
  0x4f   : > { %327 = vmatprep.subr.bf16.mxu0 %v605_v11 }
  0x52   : > { %328 = vmatpush1.bf16.msra.mxu0 %v607_v12 }
  0x53   : > { %329 = vmatprep.subr.bf16.mxu0 %v608_v13 }
  0x56   : > { %330 = vmatpush1.bf16.msra.mxu0 %v610_v14 }
  0x57   : > { %331 = vmatprep.subr.bf16.mxu0 %v611_v15 }
  0x5a   : > { %332 = vmatpush1.bf16.msra.mxu0 %v613_v16 }
  0x5d   : > { %350 = vmatmul.mubr.bf16.vlgmr.msra.gmra.mxu0 %v220_v17 }
 0x11d   : > { %v351_v18 = vpop.f32.mrf.mxu0 }
 0x11e   : > { %358 = vst [vmem:[%s216_s28] sm:$0xff] %v351_v18 }
 0x11f   : > { %v353_v19 = vpop.f32.mrf.mxu0 }
 0x120   : > { %359 = vst [vmem:[%s216_s28 + $0x8] sm:$0xff] %v353_v19 }
 0x121   : > { %v355_v20 = vpop.f32.mrf.mxu0 }
 0x122   : > { %683 = shalt.err (!%p680_p6)
}
 0x123   : > { %s684_s19 = scalar_lea.hbm %s929_s30, 256  ;;  %s688_s26 = scalar_lea.hbm %s977_s2, 512 }
 0x124   : > { %p685_p7 = scmp.ne.s32.totalorder %s929_s30, %s684_s19  ;;  %p689_p4 = scmp.lt.s32.totalorder %s929_s30, %s977_s2 }
 0x125   : > { %p690_p10 = scmp.lt.s32.totalorder %s688_s26, %s684_s19 }
 0x126   : > { %p686_p1 = pnand %p685_p7, %p828_p9 }
 0x127   : > { %p691_p8 = por %p690_p10, %p689_p4 }
 0x128   : > { %p687_p2 = pneg %p686_p1 }
 0x12a   : > { %p692_p0 = pnand %p691_p8, %p687_p2 }
 0x12c   : > { %695 = shalt.err (!%p692_p0)
}
 0x12d   : > { %524 = dma.vmem_to_hbm [thread:$0]  (%p828_p9), %s924_s29, 256, %s929_s30, %s361_s4   ;;  %v356_v21 = vpop.f32.mrf.mxu0 }
 0x12e PF: > { %s389_s27 = sand.u32 1, %s734_s9   ;;  %p984_p3 = scmp.ge.s32.totalorder %s754_s14, 2 }
 0x12f   : > { %s390_s21 = scalar_lea.sflag [#allocation4], %s389_s27 }
 0x130   : > { %p534_p13 = pnand %p984_p3, %p835_p11 }
 0x132   : > { %p535_p5 = pneg %p534_p13 }
 0x134   : > { %729 = dma.done.wait (%p535_p5), %s390_s21, 256  }
 0x135   : > { %731 = vsyncadd (%p535_p5), %s390_s21, 4294967040  ;;  %s21_s14 = sadd.s32 1, %s754_s14   ;;  %s985_s9 = smov %s738_s10 }
 0x136   : > { %p18_p12 = scmp.ge.s32.totalorder %s21_s14, 4   ;;  %s986_s10 = smov %s742_s11 }
 0x137   : > { %s987_s11 = smov %s833_s23  ;;  %s988_s12 = smov %s750_s13 }
 0x138   : > { %s989_s13 = smov %s991_s17  ;;  %20 = sbr.rel (!%p18_p12) target bundleno = 8 (0x8), region = 86 }
 0x13d   :  { %395 = vsyncpa [#allocation3], 1 }
 0x13e   :  { %397 = vsyncpa [#allocation3 + $0x1], 1 }
 0x13f   :  { %398 = vsyncpa [#allocation6], 1 }
 0x140   :  { %400 = vsyncpa [#allocation6 + $0x1], 1 }
 0x141   :  { %401 = vsyncpa [#allocation4], 1 }
 0x142   :  { %403 = vsyncpa [#allocation4 + $0x1], 1 }

</bundles_post_ra>
